<compile_context>
chip_gen: v7x
topology: tpu7x:2x2x1
jax: 0.10.0
libtpu: 0.0.40
codegen_flags: <defaults>
</compile_context>

<pallas_src>
import functools
import math

import jax
import jax.numpy as jnp
import numpy as np
from jax import lax
from jax.experimental import pallas as pl
from jax.experimental.pallas import tpu as pltpu

LN_EPS = 1e-5
_VMEM_LIMIT_BYTES = 32 * 1024 * 1024   # <= physical VMEM on v5e/v6e (128 MiB) and v7x (64 MiB)
_TILE_BYTES = 2 * 1024 * 1024          # per-buffer tile budget for the tiled path
_MAX_LANES = 4096                      # max lane extent of a tile
_FUSED_X_F32_BYTES = 3 * 1024 * 1024   # fused single-call path when f32(x) fits this budget


def _pos_encoding(max_seq_len: int, embed_dim: int) -> jnp.ndarray:
    """Deterministic sinusoidal positional encoding (same math as the module __init__)."""
    position = jnp.arange(max_seq_len, dtype=jnp.float32)[:, None]            # (S, 1)
    div_term = jnp.exp(
        jnp.arange(0, embed_dim, 2, dtype=jnp.float32) * (-math.log(10000.0) / embed_dim)
    )                                                                          # (ceil(D/2),)
    pe = jnp.zeros((max_seq_len, embed_dim), dtype=jnp.float32)
    pe = pe.at[:, 0::2].set(jnp.sin(position * div_term))
    pe = pe.at[:, 1::2].set(jnp.cos(position * div_term))
    return pe


def _pick_col_tile(C: int, max_lanes: int = _MAX_LANES) -> int:
    """Largest multiple of 128 that divides C and is <= max_lanes (falls back to full C)."""
    if C % 128 != 0:
        return C                      # full extent is always a legal block shape
    start = min(C, max_lanes)
    start -= start % 128
    for cand in range(start, 127, -128):
        if C % cand == 0:
            return cand
    return C


def _pick_row_tile(B: int, tc: int, itemsize: int, tile_bytes: int = _TILE_BYTES) -> int:
    """Row tile that divides B, is a multiple of 8 (or == B), and keeps tiles <= tile_bytes."""
    max_rows = max(1, tile_bytes // (tc * itemsize))
    if B <= max_rows:
        return B
    start = (max_rows // 8) * 8
    for cand in range(min(B, start), 7, -8):
        if B % cand == 0:
            return cand
    return B                          # fallback: full batch extent (always legal)


# ----------------------------------------------------------------------------
# Fast path: whole tensor resident in VMEM, single fused kernel (1 read, 1 write)
# ----------------------------------------------------------------------------
def _fused_kernel(x_ref, pe_ref, o_ref):
    y = x_ref[...].astype(jnp.float32) + pe_ref[...]          # (B, C) + (1, C) broadcast
    n = jnp.float32(y.size)
    mean = jnp.sum(y) / n
    d = y - mean
    var = jnp.sum(d * d) / n                                  # biased variance, centered (exact)
    inv_std = lax.rsqrt(var + jnp.float32(LN_EPS))
    o_ref[...] = (d * inv_std).astype(o_ref.dtype)
    # TODO(synk): nn.Dropout(p=0.5) in training mode would randomly zero + rescale
    # (pltpu.prng_seed / pltpu.prng_random_bits); module is treated in eval mode -> identity.


# ----------------------------------------------------------------------------
# Tiled path, pass 1: global sum / sum-of-squares -> [mean, inv_std] in SMEM
# ----------------------------------------------------------------------------
def _stats_kernel(x_ref, pe_ref, stats_ref, *, n_total: int):
    c = pl.program_id(0)              # column-tile index (outer)
    b = pl.program_id(1)              # batch-tile index (inner)

    @pl.when(jnp.logical_and(c == 0, b == 0))
    def _init():
        stats_ref[0] = jnp.float32(0.0)
        stats_ref[1] = jnp.float32(0.0)

    # Single fused sweep: one read of x per element, both moments at once.
    y = x_ref[...].astype(jnp.float32) + pe_ref[...]          # (tb, tc) + (1, tc)
    stats_ref[0] += jnp.sum(y)
    stats_ref[1] += jnp.sum(y * y)

    is_last = jnp.logical_and(c == pl.num_programs(0) - 1,
                              b == pl.num_programs(1) - 1)

    @pl.when(is_last)
    def _finalize():                  # stats -> [mean, inv_std], no host-side epilogue needed
        n = jnp.float32(n_total)
        mean = stats_ref[0] / n
        var = jnp.maximum(stats_ref[1] / n - mean * mean, jnp.float32(0.0))
        stats_ref[0] = mean
        stats_ref[1] = lax.rsqrt(var + jnp.float32(LN_EPS))


# ----------------------------------------------------------------------------
# Tiled path, pass 2: y = x + pe; out = (y - mean) * inv_std
# ----------------------------------------------------------------------------
def _normalize_kernel(stats_ref, x_ref, pe_ref, o_ref):
    mean = stats_ref[0]
    inv_std = stats_ref[1]
    y = x_ref[...].astype(jnp.float32) + pe_ref[...]
    o_ref[...] = ((y - mean) * inv_std).astype(o_ref.dtype)


def positional_encoder_forward(x: jnp.ndarray, pe: jnp.ndarray, *, force_tiled: bool = False) -> jnp.ndarray:
    """x: (B, S, D); pe: (S, D) float32. Returns global-layernormed (x + pe) in x.dtype."""
    B, S, D = x.shape
    assert pe.shape == (S, D)
    C = S * D

    # Lane-dense flattening (last dim becomes S*D, a multiple of 128 for typical S, D).
    x2d = x.reshape(B, C)
    pe2d = pe.astype(jnp.float32).reshape(1, C)

    # ---- Fast path: everything fits comfortably in VMEM -> single fused call ----
    if not force_tiled and B * C * 4 <= _FUSED_X_F32_BYTES:
        out2d = pl.pallas_call(
            _fused_kernel,
            out_shape=jax.ShapeDtypeStruct((B, C), x.dtype),
            in_specs=[pl.BlockSpec(memory_space=pltpu.MemorySpace.VMEM),
                      pl.BlockSpec(memory_space=pltpu.MemorySpace.VMEM)],
            out_specs=pl.BlockSpec(memory_space=pltpu.MemorySpace.VMEM),
            compiler_params=pltpu.CompilerParams(vmem_limit_bytes=_VMEM_LIMIT_BYTES),
        )(x2d, pe2d)
        return out2d.reshape(B, S, D)

    # ---- Tiled two-pass path (global norm over a tensor larger than VMEM) ----
    tc = _pick_col_tile(C)
    tb = _pick_row_tile(B, tc, jnp.dtype(x.dtype).itemsize)
    grid = (C // tc, B // tb)                             # column outer, batch inner

    x_spec = pl.BlockSpec((tb, tc), lambda c, b: (b, c))
    # PE index_map ignores the inner batch axis -> PE tile stays resident in VMEM.
    pe_spec = pl.BlockSpec((1, tc), lambda c, b: (0, c))

    # Pass 1: global sum / sum-of-squares, finalized to [mean, inv_std] in-kernel.
    stats = pl.pallas_call(
        functools.partial(_stats_kernel, n_total=B * C),
        out_shape=jax.ShapeDtypeStruct((2,), jnp.float32),
        grid_spec=pltpu.PrefetchScalarGridSpec(
            num_scalar_prefetch=0,
            grid=grid,
            in_specs=[x_spec, pe_spec],
            out_specs=pl.BlockSpec(memory_space=pltpu.MemorySpace.SMEM),
        ),
        compiler_params=pltpu.CompilerParams(
            dimension_semantics=("arbitrary", "arbitrary"),   # carried scalar accumulator
            vmem_limit_bytes=_VMEM_LIMIT_BYTES,
        ),
    )(x2d, pe2d)

    # Pass 2: normalize, tiled + pipelined, both grid axes parallel (megacore).
    out2d = pl.pallas_call(
        _normalize_kernel,
        out_shape=jax.ShapeDtypeStruct((B, C), x.dtype),
        grid_spec=pltpu.PrefetchScalarGridSpec(
            num_scalar_prefetch=0,
            grid=grid,
            in_specs=[
                pl.BlockSpec(memory_space=pltpu.MemorySpace.SMEM),  # [mean, inv_std] scalars
                x_spec,
                pe_spec,
            ],
            out_specs=pl.BlockSpec((tb, tc), lambda c, b: (b, c)),  # lane-dense stores
        ),
        compiler_params=pltpu.CompilerParams(
            dimension_semantics=("parallel", "parallel"),
            vmem_limit_bytes=_VMEM_LIMIT_BYTES,
        ),
    )(stats, x2d, pe2d)

    return out2d.reshape(B, S, D)


def _reference_forward(x: jnp.ndarray, pe: jnp.ndarray) -> jnp.ndarray:
    """Pure-JAX reference of the PyTorch forward (eval mode)."""
    y = x.astype(jnp.float32) + pe[None, :, :]
    mean = jnp.mean(y)
    var = jnp.mean((y - mean) ** 2)
    return ((y - mean) / jnp.sqrt(var + LN_EPS)).astype(x.dtype)


if __name__ == "__main__":
    # Primary small shape consistent with the module: batch=2, seq=8, embed=32.
    # (Launch overhead dominates at this size; it is a correctness check only.)
    batch, seq_len, embed_dim = 2, 8, 32
    key = jax.random.PRNGKey(0)
    x = jax.random.normal(key, (batch, seq_len, embed_dim), dtype=jnp.float32)
    pe = _pos_encoding(seq_len, embed_dim)

    out = jax.block_until_ready(positional_encoder_forward(x, pe))   # fused fast path
    ref = jax.block_until_ready(_reference_forward(x, pe))
    assert out.shape == x.shape and out.dtype == x.dtype
    np.testing.assert_allclose(np.asarray(out), np.asarray(ref), rtol=1e-5, atol=1e-5)

    # Secondary shape exercising the tiled multi-tile grid / cross-tile accumulation path.
    b2, s2, d2 = 8, 128, 64                      # S*D = 8192 -> column grid of 2
    x2 = jax.random.normal(jax.random.PRNGKey(0), (b2, s2, d2), dtype=jnp.float32)
    pe2 = _pos_encoding(s2, d2)
    ref2 = jax.block_until_ready(_reference_forward(x2, pe2))

    out2_tiled = jax.block_until_ready(positional_encoder_forward(x2, pe2, force_tiled=True))
    np.testing.assert_allclose(np.asarray(out2_tiled), np.asarray(ref2), rtol=1e-5, atol=1e-4)

    out2_fused = jax.block_until_ready(positional_encoder_forward(x2, pe2))
    np.testing.assert_allclose(np.asarray(out2_fused), np.asarray(ref2), rtol=1e-5, atol=1e-4)

    print("KERNEL_OK")
</pallas_src>

<mosaic_0001>
module attributes {stable_mosaic.version = 11 : i64} {
  func.func @_fused_kernel(%arg0: memref<2x256xf32, #tpu.memory_space<vmem>>, %arg1: memref<1x256xf32, #tpu.memory_space<vmem>>, %arg2: memref<2x256xf32, #tpu.memory_space<vmem>>) attributes {dimension_semantics = [], scalar_prefetch = 0 : i64, scratch_operands = 0 : i64, tpu.core_type = #tpu.core_type<tc>} {
    %c0 = arith.constant 0 : index
    %c0_0 = arith.constant 0 : index
    %0 = vector.load %arg0[%c0, %c0_0] : memref<2x256xf32, #tpu.memory_space<vmem>>, vector<2x256xf32>
    %c0_1 = arith.constant 0 : index
    %c0_2 = arith.constant 0 : index
    %1 = vector.load %arg1[%c0_1, %c0_2] : memref<1x256xf32, #tpu.memory_space<vmem>>, vector<1x256xf32>
    %2 = vector.broadcast %1 : vector<1x256xf32> to vector<2x256xf32>
    %3 = arith.addf %0, %2 : vector<2x256xf32>
    %4 = vector.shape_cast %3 : vector<2x256xf32> to vector<1x2x256xf32>
    %cst = arith.constant dense<0.000000e+00> : vector<1xf32>
    %5 = vector.multi_reduction <add>, %4, %cst [1, 2] : vector<1x2x256xf32> to vector<1xf32>
    %6 = vector.shape_cast %5 : vector<1xf32> to vector<1x1x1xf32>
    %7 = vector.extract %6[0, 0, 0] : f32 from vector<1x1x1xf32>
    %cst_3 = arith.constant 5.120000e+02 : f32
    %8 = arith.divf %7, %cst_3 : f32
    %9 = vector.broadcast %8 : f32 to vector<2x256xf32>
    %10 = arith.subf %3, %9 : vector<2x256xf32>
    %11 = arith.mulf %10, %10 : vector<2x256xf32>
    %12 = vector.shape_cast %11 : vector<2x256xf32> to vector<1x2x256xf32>
    %cst_4 = arith.constant dense<0.000000e+00> : vector<1xf32>
    %13 = vector.multi_reduction <add>, %12, %cst_4 [1, 2] : vector<1x2x256xf32> to vector<1xf32>
    %14 = vector.shape_cast %13 : vector<1xf32> to vector<1x1x1xf32>
    %15 = vector.extract %14[0, 0, 0] : f32 from vector<1x1x1xf32>
    %cst_5 = arith.constant 5.120000e+02 : f32
    %16 = arith.divf %15, %cst_5 : f32
    %cst_6 = arith.constant 9.99999974E-6 : f32
    %17 = arith.addf %16, %cst_6 : f32
    %18 = math.rsqrt %17 : f32
    %19 = vector.broadcast %18 : f32 to vector<2x256xf32>
    %20 = arith.mulf %10, %19 : vector<2x256xf32>
    %c0_7 = arith.constant 0 : index
    %c0_8 = arith.constant 0 : index
    %21 = vector.load %arg2[%c0_7, %c0_8] : memref<2x256xf32, #tpu.memory_space<vmem>>, vector<2x256xf32>
    tpu.vector_store %arg2[%c0_7, %c0_8], %20 {strides = array<i32>} : memref<2x256xf32, #tpu.memory_space<vmem>>, vector<2x256xf32>,
    return
  }
}

</mosaic_0001>

<bundles_post_ra>
// kernel: tpu_custom_call.1
= control target key start
LH: loop header
LB: loop body
LE: loop exit
PB: predicated region body
PF: predicated region fallthrough
CT: control target
= control target key end

     0   :  { %7 = vsyncpa [#allocation3], 0  ;;  %s231_s0 = inlined_call_operand.hbm [shape: f32[2,256], index: 0, kind: input, shape index: {}]   ;;  %s232_s1 = inlined_call_operand.vmem [shape: f32[1,256], index: 1, kind: input, shape index: {}]   ;;  %s233_s2 = inlined_call_operand.hbm [shape: f32[2,256], index: 2, kind: output, shape index: {}]  }
   0x1   :  { %8 = vsyncpa [#allocation4], 0  ;;  %s182_s9 = smov [#allocation2]   ;;  %s134_s13 = scalar_lea.hbm %s231_s0, 64 }
   0x2   :  { %s15_s10 = sshll.u32 %s182_s9, 4  ;;  %p135_p0 = scmp.ne.s32.totalorder %s231_s0, %s134_s13  ;;  %s16_s10 = int_to_ptr.vmem [resolvable:$true] %s15_s10 }
   0x3   :  { %p138_p1 = scmp.lt.u32.totalorder %s134_s13, %s231_s0 }
   0x5   :  { %p140_p2 = pnand %p138_p1, %p135_p0 }
   0x7   :  { %143 = shalt.err (!%p140_p2)
}
   0x8   :  { %s144_s18 = scalar_lea.vmem %s16_s10, 64  ;;  %p149_p4 = scmp.lt.s32.totalorder %s16_s10, %s16_s10 }
   0x9   :  { %p145_p3 = scmp.ne.s32.totalorder %s16_s10, %s144_s18  ;;  %p150_p5 = scmp.lt.s32.totalorder %s144_s18, %s144_s18 }
   0xb   :  { %p151_p6 = por %p150_p5, %p149_p4 }
   0xd   :  { %p152_p7 = pnand %p151_p6, %p145_p3 }
   0xf   :  { %155 = shalt.err (!%p152_p7)
}
  0x10   :  { %18 = dma.hbm_to_vmem [thread:$0]  %s231_s0, 64, %s16_s10, [#allocation3]  }
  0x11   :  { %178 = dma.done.wait [#allocation3], 64  }
  0x12   :  { %179 = vsyncadd [#allocation3], 4294967232  ;;  %v27_v0 = vlaneseq  ;;  %v183_v1 = vmov 1983009808   ;;  %v25_v7 = vld [vmem:[%s232_s1] sm:$0x3] }
  0x13   :  { %v37_v2 = vunpack.c.l.s4 %v183_v1  ;;  %v24_v12 = vld [vmem:[#allocation2] sm:$0xf]  ;;  %vm56_vm0 = vcmask 1041408   ;;  %s184_s26 = smov [#allocation5]  }
  0x14   :  { %v28_v3 = vshrl.u32 %v27_v0, 7  ;;  %s114_s27 = sshll.u32 %s184_s26, 4  ;;  %s115_s27 = int_to_ptr.vmem [resolvable:$true] %s114_s27 }
  0x15   :  { %v38_v6 = vunpack.c.0.s8 %v37_v2  ;;  %s156_s29 = scalar_lea.vmem %s115_s27, 64  ;;  %p161_p9 = scmp.lt.s32.totalorder %s115_s27, %s115_s27 }
  0x16   :  { %v29_v4 = vsub.s32 0, %v28_v3  ;;  %v33_v5 = vsub.s32 1, %v28_v3  ;;  %p157_p8 = scmp.ne.s32.totalorder %s115_s27, %s156_s29  ;;  %p162_p10 = scmp.lt.s32.totalorder %s156_s29, %s156_s29 }
  0x17   :  { %v41_v10 = vsub.s32 %v38_v6, %v28_v3 }
  0x18   :  { %v30_v8 = vrot.slane %v25_v7, %v29_v4  ;;  %v34_v9 = vrot.slane %v25_v7, %v33_v5  ;;  %p163_p11 = por %p162_p10, %p161_p9 }
  0x1a   :  { %v35_v11 = vcombine.low %v30_v8, %v34_v9  ;;  %p164_p12 = pnand %p163_p11, %p157_p8 }
  0x1c   :  { %v42_v13 = vrot.slane %v35_v11, %v41_v10 }
  0x1e   :  { %v44_v14 = vadd.f32 %v42_v13, %v24_v12 }
  0x20   :  { %v52_v15 = vrot.slane %v44_v14, %v41_v10 }
  0x22   :  { %v53_v16 = vcombine.high %v52_v15, %v52_v15  ;;  %v57_v17 = vsel %vm56_vm0, %v52_v15, 0.0 }
  0x24   :  { %v58_v18 = vsel %vm56_vm0, %v53_v16, 0.0 }
  0x25   :  { %v59_v19 = vadd.f32 %v58_v18, %v57_v17 }
  0x27   :  { %60 = vadd.xlane.f32.xlu0 %v59_v19 }
  0xb4   :  { %v61_v20 = vpop.xlane.xlu0 %60 }
  0xb5   :  { %v62_v21 = vrot.slane %v61_v20, 4 }
  0xb7   :  { %v63_v22 = vadd.f32 %v62_v21, %v61_v20 }
  0xb9   :  { %v64_v23 = vrot.slane %v63_v22, 2 }
  0xbb   :  { %v65_v24 = vadd.f32 %v64_v23, %v63_v22 }
  0xbd   :  { %v66_v25 = vrot.slane %v65_v24, 1 }
  0xbf   :  { %v67_v26 = vadd.f32 %v66_v25, %v65_v24 }
  0xc1   :  { %123 = vpush %v67_v26 }
  0xf2   :  { %s124_s0 = spop %123 }
  0xf3   :  { %s71_s1 = smul.f32 0.001953125, %s124_s0 }
  0xf5   :  { %v72_v27 = vstv %s71_s1 }
  0xf6   :  { %v73_v28 = vsub.f32 %v44_v14, %v72_v27 }
  0xf8   :  { %v74_v29 = vmul.f32 %v73_v28, %v73_v28 }
  0xfa   :  { %v82_v30 = vrot.slane %v74_v29, %v41_v10 }
  0xfc   :  { %v83_v31 = vcombine.high %v82_v30, %v82_v30  ;;  %v86_v32 = vsel %vm56_vm0, %v82_v30, 0.0 }
  0xfe   :  { %v87_v33 = vsel %vm56_vm0, %v83_v31, 0.0 }
  0xff   :  { %v88_v34 = vadd.f32 %v87_v33, %v86_v32 }
 0x101   :  { %89 = vadd.xlane.f32.xlu0 %v88_v34 }
 0x18e   :  { %v90_v35 = vpop.xlane.xlu0 %89 }
 0x18f   :  { %v91_v36 = vrot.slane %v90_v35, 4 }
 0x191   :  { %v92_v37 = vadd.f32 %v91_v36, %v90_v35 }
 0x193   :  { %v93_v38 = vrot.slane %v92_v37, 2 }
 0x195   :  { %v94_v39 = vadd.f32 %v93_v38, %v92_v37 }
 0x197   :  { %v95_v40 = vrot.slane %v94_v39, 1 }
 0x199   :  { %v96_v41 = vadd.f32 %v95_v40, %v94_v39 }
 0x19b   :  { %125 = vpush %v96_v41 }
 0x1cc   :  { %s126_s23 = spop %125 }
 0x1cd   :  { %s100_s24 = smul.f32 0.001953125, %s126_s23 }
 0x1cf   :  { %s101_s25 = sadd.f32 1e-05, %s100_s24 }
 0x1d1   :  { %v102_v42 = vstv %s101_s25 }
 0x1d2   :  { %132 = vrsqrt.f32 %v102_v42 }
 0x1dc   :  { %v133_v43 = vpop.eup %132 }
 0x1dd   :  { %127 = vpush %v133_v43 }
 0x20e   :  { %s128_s28 = spop %127 }
 0x20f   :  { %v105_v44 = vstv %s128_s28 }
 0x210   :  { %v106_v45 = vmul.f32 %v105_v44, %v73_v28 }
 0x212   :  { %107 = vst [vmem:[#allocation5] sm:$0xf] %v106_v45 }
 0x213   :  { %167 = shalt.err (!%p164_p12)
}
 0x214   :  { %s168_s4 = scalar_lea.hbm %s233_s2, 64 }
 0x215   :  { %p169_p13 = scmp.ne.s32.totalorder %s233_s2, %s168_s4  ;;  %p172_p0 = scmp.lt.u32.totalorder %s168_s4, %s233_s2 }
 0x217   :  { %p174_p1 = pnand %p172_p0, %p169_p13 }
 0x219   :  { %177 = shalt.err (!%p174_p1)
}
 0x21a   :  { %117 = dma.vmem_to_hbm [thread:$0]  %s115_s27, 64, %s233_s2, [#allocation4]  }
 0x21b   :  { %180 = dma.done.wait [#allocation4], 64  }
 0x21c   :  { %181 = vsyncadd [#allocation4], 4294967232 }
 0x21d   :  { %121 = vsyncpa [#allocation3], 1 }
 0x21e   :  { %122 = vsyncpa [#allocation4], 1 }

</bundles_post_ra>
